<compile_context>
chip_gen: v5e
topology: v5e:2x2
jax: 0.10.0
libtpu: 0.0.40
codegen_flags: <defaults>
</compile_context>

<pallas_src>
import math
import functools

import jax
import jax.numpy as jnp
from jax.experimental import pallas as pl
from jax.experimental.pallas import tpu as pltpu


def _mha_kernel(len_ref, x_ref, wqkv_ref, wo_ref, bo_ref, out_ref, attn_ref,
                *, num_heads, head_dim, causal, has_lengths):
    """One batch row per grid step: fused QKV + attention + out_proj + residual."""
    S = x_ref.shape[1]
    D = num_heads * head_dim
    inv_sqrt_dk = 1.0 / math.sqrt(head_dim)
    fill = jnp.float32(1e-10)          # the module's masked_fill value (NOT -inf) — faithful

    x = x_ref[0]                                              # (S, E) f32

    # --- fused QKV projection: one (S, E) @ (E, 3D) bf16 MXU matmul, f32 accumulate ---
    qkv = jnp.dot(x.astype(jnp.bfloat16), wqkv_ref[...],
                  preferred_element_type=jnp.float32)         # (S, 3D) f32

    # fold 1/sqrt(head_dim) into q (scales S*Hd elements instead of S*S per head)
    q = qkv[:, 0:D] * inv_sqrt_dk
    k = qkv[:, D:2 * D]
    v = qkv[:, 2 * D:3 * D]

    # faithful PyTorch `.view(batch, num_heads, seq, head_dim)` (row-major, NO transpose)
    qh = q.reshape(num_heads, S, head_dim).astype(jnp.bfloat16)
    kh = k.reshape(num_heads, S, head_dim).astype(jnp.bfloat16)
    vh = v.reshape(num_heads, S, head_dim).astype(jnp.bfloat16)

    # --- alignment scores, batched over heads on the MXU: (H,S,Hd) x (H,S,Hd) -> (H,S,S) ---
    s = jax.lax.dot_general(qh, kh, (((2,), (2,)), ((0,), (0,))),
                            preferred_element_type=jnp.float32)

    if has_lengths:                        # pad mask: key position >= length -> fill
        length = len_ref[pl.program_id(0)]
        key_pos = jax.lax.broadcasted_iota(jnp.int32, (1, 1, S), 2)
        s = jnp.where(key_pos >= length, fill, s)
    if causal:                             # triu (strictly upper) mask -> fill
        q_pos = jax.lax.broadcasted_iota(jnp.int32, (1, S, S), 1)
        k_pos = jax.lax.broadcasted_iota(jnp.int32, (1, S, S), 2)
        s = jnp.where(k_pos > q_pos, fill, s)

    # --- softmax over keys (normalisation via the EUP approximate reciprocal) ---
    s = s - jnp.max(s, axis=-1, keepdims=True)
    p = jnp.exp(s)
    p = p * pl.reciprocal(jnp.sum(p, axis=-1, keepdims=True), approx=True)
    attn_ref[0] = p                        # attention_scores output (dropout = identity)

    # --- context + faithful `.contiguous().view(batch, seq, -1)` ---
    ctx = jax.lax.dot_general(p.astype(jnp.bfloat16), vh,
                              (((2,), (1,)), ((0,), (0,))),
                              preferred_element_type=jnp.float32)   # (H, S, Hd) f32
    ctx = ctx.reshape(S, D)

    # --- out_proj + query mask + residual skip ---
    out = jnp.dot(ctx.astype(jnp.bfloat16), wo_ref[...],
                  preferred_element_type=jnp.float32) + bo_ref[...]  # (S, E) f32
    if has_lengths:
        q_valid = jax.lax.broadcasted_iota(jnp.int32, (S, 1), 0) < length
        out = jnp.where(q_valid, out, 0.0)
    out_ref[0] = out + x


def multi_head_attention(x, input_lengths, wqkv, wo, bo, *, num_heads, causal=False):
    """x: (B,S,E) f32, input_lengths: (B,) int or None, wqkv: (E,3D) bf16, wo: (D,E) bf16,
    bo: (1,E) f32.  Returns (output_skip (B,S,E) f32, attention_scores (B,H,S,S) f32)."""
    B, S, E = x.shape
    three_d = wqkv.shape[1]
    D = three_d // 3
    head_dim = D // num_heads
    has_lengths = input_lengths is not None
    lengths = (input_lengths.astype(jnp.int32) if has_lengths
               else jnp.full((B,), S, dtype=jnp.int32))

    kernel = functools.partial(_mha_kernel, num_heads=num_heads, head_dim=head_dim,
                               causal=causal, has_lengths=has_lengths)

    grid_spec = pltpu.PrefetchScalarGridSpec(
        num_scalar_prefetch=1,                 # input_lengths -> SMEM, read in-kernel
        grid=(B,),
        in_specs=[
            pl.BlockSpec((1, S, E), lambda b, lens: (b, 0, 0)),       # x: one batch row / step
            pl.BlockSpec((E, three_d), lambda b, lens: (0, 0)),       # fused Wqkv (resident)
            pl.BlockSpec((D, E), lambda b, lens: (0, 0)),             # Wo (resident)
            pl.BlockSpec((1, E), lambda b, lens: (0, 0)),             # bo (resident)
        ],
        out_specs=[
            pl.BlockSpec((1, S, E), lambda b, lens: (b, 0, 0)),               # output_skip
            pl.BlockSpec((1, num_heads, S, S), lambda b, lens: (b, 0, 0, 0)),  # attn scores
        ],
    )

    out_shape = [
        jax.ShapeDtypeStruct((B, S, E), jnp.float32),
        jax.ShapeDtypeStruct((B, num_heads, S, S), jnp.float32),
    ]

    out_skip, attn = pl.pallas_call(
        kernel,
        grid_spec=grid_spec,
        out_shape=out_shape,
        compiler_params=pltpu.CompilerParams(
            dimension_semantics=("parallel",),        # shard batch over v7x's 2 TensorCores
            vmem_limit_bytes=32 * 1024 * 1024),       # explicit, portable VMEM budget
    )(lengths, x, wqkv, wo, bo)
    return out_skip, attn


if __name__ == "__main__":
    # embed_size=128, d_out_n_heads=256, num_heads=2 (head_dim=128, lane-aligned), seq=8, batch=2
    B, S = 2, 8
    E, D, H = 128, 256, 2

    key = jax.random.PRNGKey(0)
    kx, kq, kk, kv, ko, kb = jax.random.split(key, 6)

    x = jax.random.normal(kx, (B, S, E), jnp.float32)
    input_lengths = jnp.array([8, 5], dtype=jnp.int32)        # second row has 3 padded positions

    scale = 0.05
    wq = jax.random.normal(kq, (E, D), jnp.float32) * scale   # qkv_bias=False (module default)
    wk = jax.random.normal(kk, (E, D), jnp.float32) * scale
    wv = jax.random.normal(kv, (E, D), jnp.float32) * scale
    wqkv = jnp.concatenate([wq, wk, wv], axis=1).astype(jnp.bfloat16)   # fused (E, 3D), bf16
    wo = (jax.random.normal(ko, (D, E), jnp.float32) * scale).astype(jnp.bfloat16)
    bo = jax.random.normal(kb, (1, E), jnp.float32) * scale

    out_skip, attn = multi_head_attention(x, input_lengths, wqkv, wo, bo,
                                          num_heads=H, causal=False)
    jax.block_until_ready((out_skip, attn))

    assert out_skip.shape == (B, S, E) and out_skip.dtype == jnp.float32
    assert attn.shape == (B, H, S, S) and attn.dtype == jnp.float32
    print("KERNEL_OK")
</pallas_src>

<mosaic_0001>
module attributes {stable_mosaic.version = 11 : i64} {
  func.func @_mha_kernel(%arg0: i32, %arg1: memref<2xi32, #tpu.memory_space<smem>>, %arg2: memref<1x8x128xf32, #tpu.memory_space<vmem>>, %arg3: memref<128x768xbf16, #tpu.memory_space<vmem>>, %arg4: memref<256x128xbf16, #tpu.memory_space<vmem>>, %arg5: memref<1x128xf32, #tpu.memory_space<vmem>>, %arg6: memref<1x8x128xf32, #tpu.memory_space<vmem>>, %arg7: memref<1x2x8x8xf32, #tpu.memory_space<vmem>>) attributes {dimension_semantics = [#tpu.dimension_semantics<parallel>], iteration_bounds = array<i64: 2>, scalar_prefetch = 1 : i64, scratch_operands = 0 : i64, tpu.core_type = #tpu.core_type<tc>, window_params = [{transform_indices = @transform_0, window_bounds = array<i64: 1, 8, 128>}, {pipeline_mode = #tpu.pipeline_mode<synchronous>, transform_indices = @transform_1, window_bounds = array<i64: 128, 768>}, {pipeline_mode = #tpu.pipeline_mode<synchronous>, transform_indices = @transform_2, window_bounds = array<i64: 256, 128>}, {pipeline_mode = #tpu.pipeline_mode<synchronous>, transform_indices = @transform_3, window_bounds = array<i64: 1, 128>}, {transform_indices = @transform_4, window_bounds = array<i64: 1, 8, 128>}, {transform_indices = @transform_5, window_bounds = array<i64: 1, 2, 8, 8>}]} {
    %c0 = arith.constant 0 : index
    %c0_0 = arith.constant 0 : index
    %c0_1 = arith.constant 0 : index
    %0 = vector.load %arg2[%c0, %c0_0, %c0_1] : memref<1x8x128xf32, #tpu.memory_space<vmem>>, vector<1x8x128xf32>
    %1 = vector.shape_cast %0 : vector<1x8x128xf32> to vector<8x128xf32>
    %2 = arith.truncf %1 : vector<8x128xf32> to vector<8x128xbf16>
    %c0_2 = arith.constant 0 : index
    %c0_3 = arith.constant 0 : index
    %3 = vector.load %arg3[%c0_2, %c0_3] : memref<128x768xbf16, #tpu.memory_space<vmem>>, vector<128x768xbf16>
    %cst = arith.constant dense<0.000000e+00> : vector<8x768xf32>
    %4 = tpu.matmul %2, %3, %cst {dimension_numbers = #tpu.dot_dimension_numbers<[1], [0], [0], [1], [0, 0, 1, 1], [], []>} : vector<8x128xbf16>, vector<128x768xbf16>, vector<8x768xf32> -> vector<8x768xf32>
    %5 = vector.extract_strided_slice %4 {offsets = [0, 0], sizes = [8, 256], strides = [1, 1]} : vector<8x768xf32> to vector<8x256xf32>
    %cst_4 = arith.constant 0.0883883461 : f32
    %6 = vector.broadcast %cst_4 : f32 to vector<8x256xf32>
    %7 = arith.mulf %5, %6 : vector<8x256xf32>
    %8 = vector.extract_strided_slice %4 {offsets = [0, 256], sizes = [8, 256], strides = [1, 1]} : vector<8x768xf32> to vector<8x256xf32>
    %9 = vector.extract_strided_slice %4 {offsets = [0, 512], sizes = [8, 256], strides = [1, 1]} : vector<8x768xf32> to vector<8x256xf32>
    %10 = vector.shape_cast %7 : vector<8x256xf32> to vector<2x8x128xf32>
    %11 = arith.truncf %10 : vector<2x8x128xf32> to vector<2x8x128xbf16>
    %12 = vector.shape_cast %8 : vector<8x256xf32> to vector<2x8x128xf32>
    %13 = arith.truncf %12 : vector<2x8x128xf32> to vector<2x8x128xbf16>
    %14 = vector.shape_cast %9 : vector<8x256xf32> to vector<2x8x128xf32>
    %15 = arith.truncf %14 : vector<2x8x128xf32> to vector<2x8x128xbf16>
    %cst_5 = arith.constant dense<0.000000e+00> : vector<2x8x8xf32>
    %16 = tpu.matmul %11, %13, %cst_5 {dimension_numbers = #tpu.dot_dimension_numbers<[2], [2], [1], [1], [0, 0, 0, 1, 1, 1], [0], [0]>} : vector<2x8x128xbf16>, vector<2x8x128xbf16>, vector<2x8x8xf32> -> vector<2x8x8xf32>
    %17 = arith.index_cast %arg0 : i32 to index
    %18 = memref.load %arg1[%17] : memref<2xi32, #tpu.memory_space<smem>>
    %19 = tpu.iota {dimensions = array<i32: 2>} : vector<1x1x8xi32>
    %20 = vector.broadcast %18 : i32 to vector<1x1x8xi32>
    %21 = arith.cmpi sge, %19, %20 : vector<1x1x8xi32>
    %cst_6 = arith.constant 1.000000e-10 : f32
    %22 = vector.shape_cast %21 : vector<1x1x8xi1> to vector<1x1x8xi1>
    %23 = vector.broadcast %22 : vector<1x1x8xi1> to vector<2x8x8xi1>
    %24 = vector.broadcast %cst_6 : f32 to vector<2x8x8xf32>
    %25 = arith.select %23, %24, %16 : vector<2x8x8xi1>, vector<2x8x8xf32>
    %cst_7 = arith.constant dense<0xFF800000> : vector<2x8xf32>
    %26 = vector.multi_reduction <maximumf>, %25, %cst_7 [2] : vector<2x8x8xf32> to vector<2x8xf32>
    %27 = vector.shape_cast %26 : vector<2x8xf32> to vector<2x8x1xf32>
    %28 = vector.broadcast %27 : vector<2x8x1xf32> to vector<2x8x8xf32>
    %29 = arith.subf %25, %28 : vector<2x8x8xf32>
    %30 = math.exp %29 : vector<2x8x8xf32>
    %cst_8 = arith.constant dense<0.000000e+00> : vector<2x8xf32>
    %31 = vector.multi_reduction <add>, %30, %cst_8 [2] : vector<2x8x8xf32> to vector<2x8xf32>
    %32 = vector.shape_cast %31 : vector<2x8xf32> to vector<2x8x1xf32>
    %33 = tpu.reciprocal %32 {approx = true} : vector<2x8x1xf32> -> vector<2x8x1xf32>
    %34 = vector.broadcast %33 : vector<2x8x1xf32> to vector<2x8x8xf32>
    %35 = arith.mulf %30, %34 : vector<2x8x8xf32>
    %c0_9 = arith.constant 0 : index
    %c0_10 = arith.constant 0 : index
    %c0_11 = arith.constant 0 : index
    %c0_12 = arith.constant 0 : index
    %36 = vector.load %arg7[%c0_9, %c0_10, %c0_11, %c0_12] : memref<1x2x8x8xf32, #tpu.memory_space<vmem>>, vector<1x2x8x8xf32>
    %37 = vector.shape_cast %36 : vector<1x2x8x8xf32> to vector<2x8x8xf32>
    %38 = vector.shape_cast %35 : vector<2x8x8xf32> to vector<1x2x8x8xf32>
    tpu.vector_store %arg7[%c0_9, %c0_10, %c0_11, %c0_12], %38 {strides = array<i32>} : memref<1x2x8x8xf32, #tpu.memory_space<vmem>>, vector<1x2x8x8xf32>,
    %39 = arith.truncf %35 : vector<2x8x8xf32> to vector<2x8x8xbf16>
    %cst_13 = arith.constant dense<0.000000e+00> : vector<2x8x128xf32>
    %40 = tpu.matmul %39, %15, %cst_13 {dimension_numbers = #tpu.dot_dimension_numbers<[2], [1], [1], [2], [0, 0, 0, 1, 1, 2], [0], [0]>} : vector<2x8x8xbf16>, vector<2x8x128xbf16>, vector<2x8x128xf32> -> vector<2x8x128xf32>
    %41 = vector.shape_cast %40 : vector<2x8x128xf32> to vector<8x256xf32>
    %42 = arith.truncf %41 : vector<8x256xf32> to vector<8x256xbf16>
    %c0_14 = arith.constant 0 : index
    %c0_15 = arith.constant 0 : index
    %43 = vector.load %arg4[%c0_14, %c0_15] : memref<256x128xbf16, #tpu.memory_space<vmem>>, vector<256x128xbf16>
    %cst_16 = arith.constant dense<0.000000e+00> : vector<8x128xf32>
    %44 = tpu.matmul %42, %43, %cst_16 {dimension_numbers = #tpu.dot_dimension_numbers<[1], [0], [0], [1], [0, 0, 1, 1], [], []>} : vector<8x256xbf16>, vector<256x128xbf16>, vector<8x128xf32> -> vector<8x128xf32>
    %c0_17 = arith.constant 0 : index
    %c0_18 = arith.constant 0 : index
    %45 = vector.load %arg5[%c0_17, %c0_18] : memref<1x128xf32, #tpu.memory_space<vmem>>, vector<1x128xf32>
    %46 = vector.broadcast %45 : vector<1x128xf32> to vector<8x128xf32>
    %47 = arith.addf %44, %46 : vector<8x128xf32>
    %48 = tpu.iota {dimensions = array<i32: 0>} : vector<8x1xi32>
    %49 = vector.broadcast %18 : i32 to vector<8x1xi32>
    %50 = arith.cmpi slt, %48, %49 : vector<8x1xi32>
    %cst_19 = arith.constant 0.000000e+00 : f32
    %51 = vector.shape_cast %50 : vector<8x1xi1> to vector<8x1xi1>
    %52 = vector.broadcast %51 : vector<8x1xi1> to vector<8x128xi1>
    %53 = vector.broadcast %cst_19 : f32 to vector<8x128xf32>
    %54 = arith.select %52, %47, %53 : vector<8x128xi1>, vector<8x128xf32>
    %55 = arith.addf %54, %1 : vector<8x128xf32>
    %c0_20 = arith.constant 0 : index
    %c0_21 = arith.constant 0 : index
    %c0_22 = arith.constant 0 : index
    %56 = vector.load %arg6[%c0_20, %c0_21, %c0_22] : memref<1x8x128xf32, #tpu.memory_space<vmem>>, vector<1x8x128xf32>
    %57 = vector.shape_cast %56 : vector<1x8x128xf32> to vector<8x128xf32>
    %58 = vector.shape_cast %55 : vector<8x128xf32> to vector<1x8x128xf32>
    tpu.vector_store %arg6[%c0_20, %c0_21, %c0_22], %58 {strides = array<i32>} : memref<1x8x128xf32, #tpu.memory_space<vmem>>, vector<1x8x128xf32>,
    return
  }
  func.func @transform_0(%arg0: i32, %arg1: memref<2xi32, #tpu.memory_space<smem>>) -> (i32, i32, i32) {
    %c0_i32 = arith.constant 0 : i32
    %c0_i32_0 = arith.constant 0 : i32
    %c0_i32_1 = arith.constant 0 : i32
    return %arg0, %c0_i32, %c0_i32_0 : i32, i32, i32
  }
  func.func @transform_1(%arg0: i32, %arg1: memref<2xi32, #tpu.memory_space<smem>>) -> (i32, i32) {
    %c0_i32 = arith.constant 0 : i32
    %c0_i32_0 = arith.constant 0 : i32
    %c0_i32_1 = arith.constant 0 : i32
    return %c0_i32, %c0_i32_0 : i32, i32
  }
  func.func @transform_2(%arg0: i32, %arg1: memref<2xi32, #tpu.memory_space<smem>>) -> (i32, i32) {
    %c0_i32 = arith.constant 0 : i32
    %c0_i32_0 = arith.constant 0 : i32
    %c0_i32_1 = arith.constant 0 : i32
    return %c0_i32, %c0_i32_0 : i32, i32
  }
  func.func @transform_3(%arg0: i32, %arg1: memref<2xi32, #tpu.memory_space<smem>>) -> (i32, i32) {
    %c0_i32 = arith.constant 0 : i32
    %c0_i32_0 = arith.constant 0 : i32
    %c0_i32_1 = arith.constant 0 : i32
    return %c0_i32, %c0_i32_0 : i32, i32
  }
  func.func @transform_4(%arg0: i32, %arg1: memref<2xi32, #tpu.memory_space<smem>>) -> (i32, i32, i32) {
    %c0_i32 = arith.constant 0 : i32
    %c0_i32_0 = arith.constant 0 : i32
    %c0_i32_1 = arith.constant 0 : i32
    return %arg0, %c0_i32, %c0_i32_0 : i32, i32, i32
  }
  func.func @transform_5(%arg0: i32, %arg1: memref<2xi32, #tpu.memory_space<smem>>) -> (i32, i32, i32, i32) {
    %c0_i32 = arith.constant 0 : i32
    %c0_i32_0 = arith.constant 0 : i32
    %c0_i32_1 = arith.constant 0 : i32
    %c0_i32_2 = arith.constant 0 : i32
    return %arg0, %c0_i32, %c0_i32_0, %c0_i32_1 : i32, i32, i32, i32
  }
}

</mosaic_0001>

<bundles_post_ra>
// kernel: tpu_custom_call.1
= control target key start
LH: loop header
LB: loop body
LE: loop exit
PB: predicated region body
PF: predicated region fallthrough
CT: control target
= control target key end

     0   :  { %s1807_s24 = smov [#allocation3]   ;;  %s2087_s0 = inlined_call_operand.hbm [shape: s32[2], index: 0, kind: input, shape index: {}]   ;;  %s2088_s1 = inlined_call_operand.hbm [shape: f32[2,8,128], index: 1, kind: input, shape index: {}]   ;;  %s2089_s2 = inlined_call_operand.hbm [shape: bf16[128,768], index: 2, kind: input, shape index: {}]   ;;  %s2090_s3 = inlined_call_operand.hbm [shape: bf16[256,128], index: 3, kind: input, shape index: {}]   ;;  %s2091_s4 = inlined_call_operand.vmem [shape: f32[1,128], index: 4, kind: input, shape index: {}]   ;;  %s2092_s5 = inlined_call_operand.hbm [shape: f32[2,8,128], index: 5, kind: output, shape index: {0}]   ;;  %s2093_s6 = inlined_call_operand.hbm [shape: f32[2,2,8,8], index: 6, kind: output, shape index: {1}]  }
   0x1   :  { %2095 = sst [smem:[#allocation18_spill]] %s2088_s1  ;;  %s13_s23 = sshll.u32 %s2087_s0, 4  ;;  %s14_s23 = int_to_ptr.hbm [resolvable:$true] %s13_s23 }
   0x2   :  { %16 = dma.hbm_to_smem %s14_s23, 16, %s1807_s24, [#allocation2] }
   0x3   :  { %1773 = dma.done.wait [#allocation2], 16 }
   0x4   :  { %1774 = vsyncadd [#allocation2], 4294967280 }
   0x5   :  { %19 = sfence }
   0x6   :  { %20 = vsyncpa [#allocation5], 0 }
   0x7   :  { %22 = vsyncpa [#allocation5 + $0x1], 0 }
   0x8   :  { %23 = vsyncpa [#allocation8], 0 }
   0x9   :  { %24 = vsyncpa [#allocation6], 0 }
   0xa   :  { %26 = vsyncpa [#allocation6 + $0x1], 0 }
   0xb   :  { %27 = vsyncpa [#allocation12], 0 }
   0xc   :  { %29 = vsyncpa [#allocation12 + $0x1], 0  ;;  %s1856_s25 = smov 0   ;;  %s1858_s26 = smov 0  }
   0xd   :  { %s1860_s27 = smov 0   ;;  %s1862_s0 = smov 0  }
   0xe LB: > { %s192_s30 = sshll.u32 %s2089_s2, 4  ;;  %s1880_s7 = sadd.s32 4294967295, %s1805_s0   ;;  %s1805_s0 = sphi %s1862_s0, %s2110_s0   ;;  %s1801_s27 = sphi %s1860_s27, %s2109_s27   ;;  %s1797_s26 = sphi %s1858_s26, %s2108_s26   ;;  %s1793_s25 = sphi %s1856_s25, %s2107_s25   ;;  %s193_s30 = int_to_ptr.hbm [resolvable:$true] %s192_s30 }
   0xf   : > { %p1167_p0 = scmp.ge.s32.totalorder %s1805_s0, 1  ;;  %p56_p1 = scmp.eq.s32.totalorder %s1880_s7, 0 }
  0x10   : > { %p181_p2 = scmp.lt.s32.totalorder %s1805_s0, 3  ;;  %s1808_s9 = smov [#allocation7]  }
  0x11   : > { %s194_s10 = sshll.u32 %s1808_s9, 4  ;;  %s206_s13 = sshll.u32 %s2090_s3, 4  ;;  %s195_s10 = int_to_ptr.vmem [resolvable:$true] %s194_s10  ;;  %s207_s13 = int_to_ptr.hbm [resolvable:$true] %s206_s13 }
  0x12   : > { %p1885_p3 = pnand %p1167_p0, %p181_p2  ;;  %s1809_s14 = smov [#allocation9]  }
  0x13   : > { %s208_s15 = sshll.u32 %s1809_s14, 4  ;;  %s1810_s16 = smov 384   ;;  %s209_s15 = int_to_ptr.vmem [resolvable:$true] %s208_s15 }
  0x14   : > { %p1523_p4 = pneg %p1885_p3  ;;  %s1811_s17 = smov 24  }
  0x15   : > { %s1812_s18 = smov 64   ;;  %s1813_s19 = smov 4  }
  0x16   : > { %p1524_p6 = pnand %p1523_p4, %p56_p1  ;;  %s1166_s20 = sadd.s32 4294967294, %s1805_s0  }
  0x17   : > { %s1899_s21 = sadd.s32 1, %s1805_s0   ;;  %s42_s23 = sadd.s32 1, %s1801_s27 }
  0x18   : > { %1526 = dma.hbm_to_vmem [thread:$0]  (!%p1524_p6), %s193_s30, 6144, %s195_s10, [#allocation8], %s1810_s16, %s1810_s16, %s1811_s17  }
  0x19   : > { %1529 = dma.hbm_to_vmem [thread:$0]  (!%p1524_p6), %s207_s13, 2048, %s209_s15, [#allocation8], %s1812_s18, %s1812_s18, %s1813_s19  }
  0x1a   : > { %s39_s22 = ssub.s32 %s1805_s0, %s1899_s21  ;;  %p49_p8 = scmp.ne.s32.totalorder %s1801_s27, %s1797_s26 }
  0x1b   : > { %p40_p7 = scmp.eq.s32.totalorder %s39_s22, 0  ;;  %p50_p9 = scmp.eq.s32.totalorder %s1805_s0, 0 }
  0x1c   : > { %p55_p10 = scmp.ne.s32.totalorder %s1797_s26, %s1793_s25  ;;  %p142_p13 = scmp.eq.s32.totalorder %s1880_s7, 1 }
  0x1d   : > { %s1910_s24 = scalar_select %p40_p7, %s1801_s27, %s42_s23  }
  0x1e   : > { %p1912_p11 = por %p50_p9, %p49_p8  ;;  %p1918_p12 = por %p56_p1, %p55_p10 }
  0x1f   : > { %p148_p0 = scmp.eq.s32.totalorder %s1166_s20, 1  ;;  %p1543_p2 = scmp.lt.s32.totalorder %s1805_s0, 2 }
  0x20   : > { %s225_s30 = sand.u32 1, %s1801_s27   ;;  %p1925_p4 = por %p142_p13, %p49_p8 }
  0x21   : > { %p1929_p6 = por %p148_p0, %p55_p10  ;;  %s1171_s11 = sshll.u32 %s225_s30, 3 }
  0x22   : > { %s1172_s12 = sshll.u32 %s1805_s0, 3  ;;  %s2101_s1 = sld [smem:[#allocation18_spill]] }
  0x23   : > { %s229_s16 = scalar_lea.vmem [#allocation4], %s1171_s11  ;;  %p1939_p7 = pnand %p1543_p2, %p1912_p11 }
  0x24   : > { %s237_s17 = sshll.u32 %s229_s16, 4  ;;  %s226_s20 = scalar_lea.sflag [#allocation5], %s225_s30  ;;  %s238_s17 = int_to_ptr.vmem [resolvable:$true] %s237_s17 }
  0x25   : > { %p1675_p9 = pneg %p1939_p7 }
  0x28   : > { %s233_s15 = scalar_lea.hbm %s2101_s1, %s1172_s12  ;;  %s1678_s13 = scalar_lea.hbm %s2101_s1, 16 }
  0x29   : > { %s235_s18 = sshll.u32 %s233_s15, 4  ;;  %s236_s18 = int_to_ptr.hbm [resolvable:$true] %s235_s18 }
  0x2a   : > { %s1671_s22 = sshra.s32 %s236_s18, 4  ;;  %s1672_s22 = int_to_ptr.hbm [resolvable:$true] %s1671_s22 }
  0x2b   : > { %s1673_s23 = scalar_lea.hbm %s1672_s22, 8  ;;  %p1679_p11 = scmp.lt.s32.totalorder %s1672_s22, %s2101_s1 }
  0x2c   : > { %p1674_p8 = scmp.ne.s32.totalorder %s1672_s22, %s1673_s23  ;;  %p1680_p0 = scmp.lt.s32.totalorder %s1678_s13, %s1673_s23 }
  0x2e   : > { %p1676_p10 = pnand %p1675_p9, %p1674_p8  ;;  %p1681_p2 = por %p1680_p0, %p1679_p11 }
  0x30   : > { %p1677_p13 = pneg %p1676_p10 }
  0x32   : > { %p1682_p5 = pnand %p1681_p2, %p1677_p13 }
  0x34   : > { %1685 = shalt.err (!%p1682_p5)
}
  0x35   : > { %1533 = dma.hbm_to_vmem [thread:$0]  (!%p1939_p7), %s236_s18, 128, %s238_s17, %s226_s20  }
  0x36   : > { %246 = sbr.rel (%p1885_p3) target bundleno = 920 (0x398), region = 36  ;;  %s1956_s30 = sand.u32 (!%p1885_p3), 1, %s1797_s26  }
  0x37   : > { %s2094_s15 = sshll.u32 (!%p1885_p3), %s1956_s30, 3  ;;  %s249_s16 = scalar_lea.sflag (!%p1885_p3), [#allocation5], %s1956_s30 }
  0x38   : > { %s1962_s22 = scalar_lea.vmem (!%p1885_p3), [#allocation4], %s2094_s15 }
  0x3b   : > { %1776 = dma.done.wait (%p1918_p12), %s249_s16, 128  }
  0x3c   : > { %1778 = vsyncadd (%p1918_p12), %s249_s16, 4294967168 }
  0x3d   : > { %1780 = dma.done.wait (%p56_p1), [#allocation8], 8192  }
  0x3e   : > { %1782 = vsyncadd (%p56_p1), [#allocation8], 4294959104  ;;  %v1357_v0 = vld [vmem:[#allocation7 + $0x158] sm:$0xf]  ;;  %v1490_v1 = vld [vmem:[#allocation7 + $0x16c] sm:$0xf0] }
  0x3f   : > { %v1487_v2 = vld [vmem:[#allocation7 + $0x15c] sm:$0xf]  ;;  %v1358_v3 = vor.u32 %v1490_v1, %v1357_v0  ;;  %v1359_v4 = vld [vmem:[#allocation7 + $0x170] sm:$0xf0]  ;;  %v1333_v5 = vld [vmem:[#allocation7 + $0x128] sm:$0xf] }
  0x40   : > { %v1484_v6 = vld [vmem:[#allocation7 + $0x13c] sm:$0xf0]  ;;  %v1362_v7 = vor.u32 %v1487_v2, %v1359_v4  ;;  %v1481_v8 = vld [vmem:[#allocation7 + $0x12c] sm:$0xf]  ;;  %v1335_v9 = vld [vmem:[#allocation7 + $0x140] sm:$0xf0] }
  0x41   : > { %612 = vmatpush.bf16.msra.mxu2 %v1358_v3  ;;  %v1334_v10 = vor.u32 %v1484_v6, %v1333_v5  ;;  %v1309_v11 = vld [vmem:[#allocation7 + $0xf8] sm:$0xf]  ;;  %v1338_v12 = vor.u32 %v1481_v8, %v1335_v9  ;;  %v1478_v13 = vld [vmem:[#allocation7 + $0x10c] sm:$0xf0]  ;;  %v1486_v14 = vld [vmem:[#allocation7 + $0x154] sm:$0xf] }
  0x42   : > { %625 = vmatpush.bf16.msra.mxu3 %v1362_v7  ;;  %v1351_v15 = vld [vmem:[#allocation7 + $0x168] sm:$0xf0]  ;;  %v1475_v16 = vld [vmem:[#allocation7 + $0xfc] sm:$0xf]  ;;  %v1311_v17 = vld [vmem:[#allocation7 + $0x110] sm:$0xf0]  ;;  %v1310_v22 = vor.u32 %v1478_v13, %v1309_v11 }
  0x43   : > { %v1354_v18 = vor.u32 %v1486_v14, %v1351_v15  ;;  %v1349_v19 = vld [vmem:[#allocation7 + $0x150] sm:$0xf]  ;;  %v1489_v20 = vld [vmem:[#allocation7 + $0x164] sm:$0xf0]  ;;  %v1480_v21 = vld [vmem:[#allocation7 + $0x124] sm:$0xf]  ;;  %v1314_v27 = vor.u32 %v1475_v16, %v1311_v17 }
  0x44   : > { %v1285_v23 = vld [vmem:[#allocation7 + $0xc8] sm:$0xf]  ;;  %v1472_v24 = vld [vmem:[#allocation7 + $0xdc] sm:$0xf0]  ;;  %v1350_v25 = vor.u32 %v1489_v20, %v1349_v19  ;;  %v1327_v26 = vld [vmem:[#allocation7 + $0x138] sm:$0xf0] }
  0x45   : > { %613 = vmatpush.bf16.msra.mxu2 %v1334_v10  ;;  %599 = vmatpush.bf16.msra.mxu1 %v1354_v18  ;;  %v1469_v28 = vld [vmem:[#allocation7 + $0xcc] sm:$0xf]  ;;  %v1287_v29 = vld [vmem:[#allocation7 + $0xe0] sm:$0xf0]  ;;  %v1330_v30 = vor.u32 %v1480_v21, %v1327_v26  ;;  %v1325_v31 = vld [vmem:[#allocation7 + $0x120] sm:$0xf]  ;;  %v1286_v36 = vor.u32 %v1472_v24, %v1285_v23 }
  0x46   : > { %626 = vmatpush.bf16.msra.mxu3 %v1338_v12  ;;  %586 = vmatpush.bf16.msra.mxu0 %v1350_v25  ;;  %v1483_v32 = vld [vmem:[#allocation7 + $0x134] sm:$0xf0]  ;;  %v1474_v33 = vld [vmem:[#allocation7 + $0xf4] sm:$0xf]  ;;  %v1303_v34 = vld [vmem:[#allocation7 + $0x108] sm:$0xf0]  ;;  %v1290_v41 = vor.u32 %v1469_v28, %v1287_v29 }
  0x47   : > { %v1326_v35 = vor.u32 %v1483_v32, %v1325_v31  ;;  %v1261_v37 = vld [vmem:[#allocation7 + $0x98] sm:$0xf]  ;;  %v1306_v38 = vor.u32 %v1474_v33, %v1303_v34  ;;  %v1301_v39 = vld [vmem:[#allocation7 + $0xf0] sm:$0xf]  ;;  %v1477_v40 = vld [vmem:[#allocation7 + $0x104] sm:$0xf0] }
  0x48   : > { %v1466_v42 = vld [vmem:[#allocation7 + $0xac] sm:$0xf0]  ;;  %v1468_v43 = vld [vmem:[#allocation7 + $0xc4] sm:$0xf]  ;;  %v1279_v44 = vld [vmem:[#allocation7 + $0xd8] sm:$0xf0]  ;;  %v1302_v47 = vor.u32 %v1477_v40, %v1301_v39 }
  0x49   : > { %614 = vmatpush.bf16.msra.mxu2 %v1310_v22  ;;  %600 = vmatpush.bf16.msra.mxu1 %v1330_v30  ;;  %v1463_v45 = vld [vmem:[#allocation7 + $0x9c] sm:$0xf]  ;;  %v1263_v46 = vld [vmem:[#allocation7 + $0xb0] sm:$0xf0]  ;;  %v1277_v48 = vld [vmem:[#allocation7 + $0xc0] sm:$0xf]  ;;  %v1262_v50 = vor.u32 %v1466_v42, %v1261_v37  ;;  %v1282_v52 = vor.u32 %v1468_v43, %v1279_v44 }
  0x4a   : > { %627 = vmatpush.bf16.msra.mxu3 %v1314_v27  ;;  %587 = vmatpush.bf16.msra.mxu0 %v1326_v35  ;;  %v1471_v49 = vld [vmem:[#allocation7 + $0xd4] sm:$0xf0]  ;;  %v1237_v51 = vld [vmem:[#allocation7 + $0x68] sm:$0xf]  ;;  %v1266_v53 = vor.u32 %v1463_v45, %v1263_v46  ;;  %v1460_v54 = vld [vmem:[#allocation7 + $0x7c] sm:$0xf0] }
  0x4b   : > { %v1462_v55 = vld [vmem:[#allocation7 + $0x94] sm:$0xf]  ;;  %v1255_v56 = vld [vmem:[#allocation7 + $0xa8] sm:$0xf0]  ;;  %v1239_v58 = vld [vmem:[#allocation7 + $0x80] sm:$0xf0]  ;;  %v1278_v59 = vor.u32 %v1471_v49, %v1277_v48  ;;  %v1238_v62 = vor.u32 %v1460_v54, %v1237_v51 }
  0x4c   : > { %v1457_v57 = vld [vmem:[#allocation7 + $0x6c] sm:$0xf]  ;;  %v1253_v60 = vld [vmem:[#allocation7 + $0x90] sm:$0xf]  ;;  %v1465_v61 = vld [vmem:[#allocation7 + $0xa4] sm:$0xf0]  ;;  %v1258_v0 = vor.u32 %v1462_v55, %v1255_v56 }
  0x4d   : > { %615 = vmatpush.bf16.msra.mxu2 %v1286_v36  ;;  %601 = vmatpush.bf16.msra.mxu1 %v1306_v38  ;;  %v1213_v63 = vld [vmem:[#allocation7 + $0x38] sm:$0xf]  ;;  %v1242_v1 = vor.u32 %v1457_v57, %v1239_v58  ;;  %v1454_v2 = vld [vmem:[#allocation7 + $0x4c] sm:$0xf0]  ;;  %v1456_v3 = vld [vmem:[#allocation7 + $0x64] sm:$0xf]  ;;  %v1254_v7 = vor.u32 %v1465_v61, %v1253_v60 }
  0x4e   : > { %628 = vmatpush.bf16.msra.mxu3 %v1290_v41  ;;  %588 = vmatpush.bf16.msra.mxu0 %v1302_v47  ;;  %v1231_v4 = vld [vmem:[#allocation7 + $0x78] sm:$0xf0]  ;;  %v1215_v6 = vld [vmem:[#allocation7 + $0x50] sm:$0xf0]  ;;  %v1229_v8 = vld [vmem:[#allocation7 + $0x60] sm:$0xf]  ;;  %v1214_v10 = vor.u32 %v1454_v2, %v1213_v63 }
  0x4f   : > { %v1451_v5 = vld [vmem:[#allocation7 + $0x3c] sm:$0xf]  ;;  %v1459_v9 = vld [vmem:[#allocation7 + $0x74] sm:$0xf0]  ;;  %v1189_v11 = vld [vmem:[#allocation7 + $0x8] sm:$0xf]  ;;  %v1234_v12 = vor.u32 %v1456_v3, %v1231_v4 }
  0x50   : > { %v1218_v13 = vor.u32 %v1451_v5, %v1215_v6  ;;  %v1448_v14 = vld [vmem:[#allocation7 + $0x1c] sm:$0xf0]  ;;  %v1450_v15 = vld [vmem:[#allocation7 + $0x34] sm:$0xf]  ;;  %v1207_v16 = vld [vmem:[#allocation7 + $0x48] sm:$0xf0]  ;;  %v1230_v19 = vor.u32 %v1459_v9, %v1229_v8 }
  0x51   : > { %616 = vmatpush.bf16.msra.mxu2 %v1262_v50  ;;  %602 = vmatpush.bf16.msra.mxu1 %v1282_v52  ;;  %v1445_v17 = vld [vmem:[#allocation7 + $0xc] sm:$0xf]  ;;  %v1191_v18 = vld [vmem:[#allocation7 + $0x20] sm:$0xf0]  ;;  %v1205_v20 = vld [vmem:[#allocation7 + $0x30] sm:$0xf]  ;;  %v1190_v22 = vor.u32 %v1448_v14, %v1189_v11  ;;  %v1210_v24 = vor.u32 %v1450_v15, %v1207_v16 }
  0x52   : > { %629 = vmatpush.bf16.msra.mxu3 %v1266_v53  ;;  %589 = vmatpush.bf16.msra.mxu0 %v1278_v59  ;;  %v1453_v21 = vld [vmem:[#allocation7 + $0x44] sm:$0xf0]  ;;  %v1973_v23 = vld [vmem:[%s1962_s22] sm:$0xff]  ;;  %v1194_v25 = vor.u32 %v1445_v17, %v1191_v18  ;;  %v1444_v26 = vld [vmem:[#allocation7 + $0x4] sm:$0xf]  ;;  %vm669_vm0 = vcmask 1043456  }
  0x53   : > { %v1183_v27 = vld [vmem:[#allocation7 + $0x18] sm:$0xf0]  ;;  %v1206_v28 = vor.u32 %v1453_v21, %v1205_v20  ;;  %v1977_v29 = vpack.c.bf16 %v1973_v23, %v1973_v23  ;;  %v1181_v30 = vld [vmem:[#allocation7] sm:$0xf]  ;;  %v1447_v31 = vld [vmem:[#allocation7 + $0x14] sm:$0xf0]  ;;  %v748_v21 = vlaneseq }
  0x54   : > { %v1186_v32 = vor.u32 %v1444_v26, %v1183_v27  ;;  %v1182_v33 = vor.u32 %v1447_v31, %v1181_v30  ;;  %v1814_v34 = vmov 1935823168   ;;  %v1488_v63 = vld [vmem:[#allocation7 + $0x164] sm:$0xf]  ;;  %v1491_v3 = vld [vmem:[#allocation7 + $0x174] sm:$0xf0] }
  0x55   : > { %617 = vmatpush.bf16.msra.mxu2 %v1238_v62  ;;  %603 = vmatpush.bf16.msra.mxu1 %v1258_v0  ;;  %v676_v35 = vunpack.c.l.s4 %v1814_v34  ;;  %v1367_v0 = vld [vmem:[#allocation7 + $0x178] sm:$0xf0]  ;;  %v1482_v4 = vld [vmem:[#allocation7 + $0x134] sm:$0xf]  ;;  %v1343_v5 = vld [vmem:[#allocation7 + $0x148] sm:$0xf0] }
  0x56   : > { %630 = vmatpush.bf16.msra.mxu3 %v1242_v1  ;;  %590 = vmatpush.bf16.msra.mxu0 %v1254_v7  ;;  %v1365_v1 = vld [vmem:[#allocation7 + $0x160] sm:$0xf]  ;;  %v1370_v2 = vor.u32 %v1488_v63, %v1367_v0  ;;  %v1341_v7 = vld [vmem:[#allocation7 + $0x130] sm:$0xf]  ;;  %v1485_v8 = vld [vmem:[#allocation7 + $0x144] sm:$0xf0]  ;;  %v1346_v9 = vor.u32 %v1482_v4, %v1343_v5 }
  0x57   : > { %v1983_v43 = vunpack.c.0.s8 %v676_v35  ;;  %v1366_v6 = vor.u32 %v1491_v3, %v1365_v1  ;;  %v1476_v11 = vld [vmem:[#allocation7 + $0x104] sm:$0xf]  ;;  %v1479_v14 = vld [vmem:[#allocation7 + $0x114] sm:$0xf0]  ;;  %s1994_s8 = sld [smem:[#allocation3 + %s1880_s7]]  ;;  %v749_v30 = vand.u32 127, %v748_v21 }
  0x58   : > { %v1470_v17 = vld [vmem:[#allocation7 + $0xd4] sm:$0xf]  ;;  %v1295_v18 = vld [vmem:[#allocation7 + $0xe8] sm:$0xf0]  ;;  %v1473_v20 = vld [vmem:[#allocation7 + $0xe4] sm:$0xf0] }
  0x59   : > { %618 = vmatpush.bf16.msra.mxu2 %v1214_v10  ;;  %604 = vmatpush.bf16.msra.mxu1 %v1234_v12  ;;  %v1342_v10 = vor.u32 %v1485_v8, %v1341_v7  ;;  %v1319_v12 = vld [vmem:[#allocation7 + $0x118] sm:$0xf0]  ;;  %v1269_v27 = vld [vmem:[#allocation7 + $0xa0] sm:$0xf]  ;;  %v1458_v34 = vld [vmem:[#allocation7 + $0x74] sm:$0xf] }
  0x5a   : > { %631 = vmatpush.bf16.msra.mxu3 %v1218_v13  ;;  %591 = vmatpush.bf16.msra.mxu0 %v1230_v19  ;;  %v1317_v13 = vld [vmem:[#allocation7 + $0x100] sm:$0xf]  ;;  %v1322_v15 = vor.u32 %v1476_v11, %v1319_v12  ;;  %v1293_v19 = vld [vmem:[#allocation7 + $0xd0] sm:$0xf]  ;;  %v1271_v26 = vld [vmem:[#allocation7 + $0xb8] sm:$0xf0] }
  0x5b   : > { %v1318_v16 = vor.u32 %v1479_v14, %v1317_v13  ;;  %v1247_v35 = vld [vmem:[#allocation7 + $0x88] sm:$0xf0]  ;;  %vm756_vm2 = vcmask 64512   ;;  %s1178_s29 = sshll.u32 %s1956_s30, 4  ;;  %s1508_s18 = sshll.u32 %s1880_s7, 4 }
  0x5c   : > { %s2021_s17 = scalar_lea.vmem [#allocation11], %s1178_s29  ;;  %s1037_s23 = scalar_lea.hbm %s2093_s6, %s1508_s18 }
  0x5d   : > { %619 = vmatpush.bf16.msra.mxu2 %v1190_v22  ;;  %605 = vmatpush.bf16.msra.mxu1 %v1210_v24  ;;  %v1298_v22 = vor.u32 %v1470_v17, %v1295_v18  ;;  %v1294_v24 = vor.u32 %v1473_v20, %v1293_v19  ;;  %s1038_s11 = sshll.u32 %s2021_s17, 4  ;;  %s1040_s12 = sshll.u32 %s1037_s23, 4  ;;  %s1039_s11 = int_to_ptr.vmem [resolvable:$true] %s1038_s11  ;;  %s1041_s12 = int_to_ptr.hbm [resolvable:$true] %s1040_s12 }
  0x5e   : > { %632 = vmatpush.bf16.msra.mxu3 %v1194_v25  ;;  %592 = vmatpush.bf16.msra.mxu0 %v1206_v28  ;;  %v1464_v25 = vld [vmem:[#allocation7 + $0xa4] sm:$0xf]  ;;  %v1467_v28 = vld [vmem:[#allocation7 + $0xb4] sm:$0xf0]  ;;  %s1012_s13 = scalar_lea.sflag [#allocation12], %s1956_s30  ;;  %s1715_s14 = sshra.s32 %s1041_s12, 4  ;;  %s1716_s14 = int_to_ptr.hbm [resolvable:$true] %s1715_s14 }
  0x5f   : > { %v1274_v31 = vor.u32 %v1464_v25, %v1271_v26  ;;  %v1498_v25 = vld [vmem:[#allocation9 + $0x30] sm:$0xff]  ;;  %s1717_s28 = scalar_lea.hbm %s1716_s14, 16  ;;  %s1721_s29 = scalar_lea.hbm %s2093_s6, 32 }
  0x60   : > { %620 = vmatmul.bf16.vlgmr.msra.gmra.mxu2 %v1977_v29  ;;  %v1506_v26 = vld [vmem:[#allocation9 + $0x70] sm:$0xff]  ;;  %p1718_p1 = scmp.ne.s32.totalorder %s1716_s14, %s1717_s28  ;;  %p1722_p12 = scmp.lt.s32.totalorder %s1716_s14, %s2093_s6 }
  0x61   : > { %633 = vmatmul.bf16.vlgmr.msra.gmra.mxu3 %v1977_v29  ;;  %606 = vmatpush.bf16.msra.mxu1 %v1186_v32  ;;  %v750_v32 = vstv %s1994_s8  ;;  %p1723_p7 = scmp.lt.s32.totalorder %s1721_s29, %s1717_s28 }
  0x62   : > { %593 = vmatpush.bf16.msra.mxu0 %v1182_v33  ;;  %v1270_v33 = vor.u32 %v1467_v28, %v1269_v27  ;;  %vm2000_vm1 = vcmp.ge.s32.totalorder %v749_v30, %v750_v32  ;;  %v1497_v27 = vld [vmem:[#allocation9 + $0x28] sm:$0xff]  ;;  %p1719_p3 = pnand %p1718_p1, %p1925_p4 }
  0x63   : > { %v1505_v28 = vld [vmem:[#allocation9 + $0x68] sm:$0xff]  ;;  %p1724_p8 = por %p1723_p7, %p1722_p12 }
  0x64   : > { %607 = vmatmul.bf16.vlgmr.msra.gmra.mxu1 %v1977_v29  ;;  %p1720_p5 = pneg %p1719_p3 }
  0x65   : > { %594 = vmatmul.bf16.vlgmr.msra.gmra.mxu0 %v1977_v29  ;;  %651 = vmatpush.bf16.msrb.mxu1 %v1370_v2 }
  0x66   : > { %638 = vmatpush.bf16.msrb.mxu0 %v1366_v6  ;;  %p1725_p9 = pnand %p1724_p8, %p1720_p5 }
  0x69   : > { %652 = vmatpush.bf16.msrb.mxu1 %v1346_v9 }
  0x6a   : > { %639 = vmatpush.bf16.msrb.mxu0 %v1342_v10 }
  0x6d   : > { %653 = vmatpush.bf16.msrb.mxu1 %v1322_v15 }
  0x6e   : > { %640 = vmatpush.bf16.msrb.mxu0 %v1318_v16 }
  0x71   : > { %654 = vmatpush.bf16.msrb.mxu1 %v1298_v22  ;;  %v1499_v22 = vld [vmem:[#allocation9 + $0x38] sm:$0xff] }
  0x72   : > { %641 = vmatpush.bf16.msrb.mxu0 %v1294_v24  ;;  %v1507_v24 = vld [vmem:[#allocation9 + $0x78] sm:$0xff] }
  0x75   : > { %655 = vmatpush.bf16.msrb.mxu1 %v1274_v31 }
  0x76   : > { %642 = vmatpush.bf16.msrb.mxu0 %v1270_v33 }
  0xe1   : > { %v608_v36 = vpop.f32.mrf.mxu1 }
  0xe2   : > { %v665_v37 = vmul.f32 0.088388346, %v608_v36  ;;  %v595_v39 = vpop.f32.mrf.mxu0  ;;  %v1245_v36 = vld [vmem:[#allocation7 + $0x70] sm:$0xf] }
  0xe3   : > { %v621_v38 = vpop.f32.mrf.mxu2  ;;  %v664_v42 = vmul.f32 0.088388346, %v595_v39  ;;  %v1250_v39 = vor.u32 %v1458_v34, %v1247_v35 }
  0xe4   : > { %v634_v40 = vpop.f32.mrf.mxu3  ;;  %v668_v41 = vrot.slane %v665_v37, 4  ;;  %v1461_v37 = vld [vmem:[#allocation7 + $0x84] sm:$0xf0] }
  0xe5   : > { %v687_v44 = vrot.slane %v634_v40, 4  ;;  %v1246_v40 = vor.u32 %v1461_v37, %v1245_v36  ;;  %656 = vmatpush.bf16.msrb.mxu1 %v1250_v39  ;;  %v1504_v39 = vld [vmem:[#allocation9 + $0x60] sm:$0xff] }
  0xe6   : > { %v671_v45 = vsel %vm669_vm0, %v668_v41, %v664_v42  ;;  %v670_v48 = vsel %vm669_vm0, %v664_v42, %v668_v41  ;;  %v1452_v41 = vld [vmem:[#allocation7 + $0x44] sm:$0xf]  ;;  %v1223_v42 = vld [vmem:[#allocation7 + $0x58] sm:$0xf0] }
  0xe7   : > { %v688_v46 = vsel %vm669_vm0, %v621_v38, %v687_v44  ;;  %v689_v47 = vsel %vm669_vm0, %v687_v44, %v621_v38  ;;  %v672_v51 = vrot.slane %v671_v45, 4  ;;  %v678_v56 = vperm.slane %v670_v48, %v1983_v43  ;;  %v1221_v45 = vld [vmem:[#allocation7 + $0x40] sm:$0xf]  ;;  %643 = vmatpush.bf16.msrb.mxu0 %v1246_v40  ;;  %v1495_v40 = vld [vmem:[#allocation9 + $0x18] sm:$0xff] }
  0xe8   : > { %v696_v49 = vperm.slane %v688_v46, %v1983_v43  ;;  %v690_v50 = vrot.slane %v689_v47, 4  ;;  %v1455_v46 = vld [vmem:[#allocation7 + $0x54] sm:$0xf0]  ;;  %v1496_v38 = vld [vmem:[#allocation9 + $0x20] sm:$0xff] }
  0xe9   : > { %v610_v52 = vpop.f32.mrf.mxu1  ;;  %v682_v60 = vperm.slane %v672_v51, %v1983_v43  ;;  %v683_v61 = vpack.c.bf16 %v678_v56, %v678_v56  ;;  %v1222_v51 = vor.u32 %v1455_v46, %v1221_v45  ;;  %v1493_v45 = vld [vmem:[#allocation9 + $0x8] sm:$0xff] }
  0xea   : > { %v701_v53 = vpack.c.bf16 %v696_v49, %v696_v49  ;;  %v700_v54 = vperm.slane %v690_v50, %v1983_v43  ;;  %v597_v57 = vpop.f32.mrf.mxu0  ;;  %v1226_v50 = vor.u32 %v1452_v41, %v1223_v42  ;;  %v1446_v52 = vld [vmem:[#allocation7 + $0x14] sm:$0xf]  ;;  %v1503_v41 = vld [vmem:[#allocation9 + $0x58] sm:$0xff]  ;;  %v1501_v46 = vld [vmem:[#allocation9 + $0x48] sm:$0xff] }
  0xeb   : > { %v623_v55 = vpop.f32.mrf.mxu2  ;;  %v684_v62 = vpack.c.bf16 %v682_v60, %v682_v60  ;;  %644 = vmatpush.bf16.msrb.mxu0 %v1222_v51  ;;  %v1494_v42 = vld [vmem:[#allocation9 + $0x10] sm:$0xff] }
  0xec   : > { %v636_v58 = vpop.f32.mrf.mxu3  ;;  %728 = vmatpush.bf16.xpose.msrb.mxu2 %v701_v53  ;;  %v702_v59 = vpack.c.bf16 %v700_v54, %v700_v54  ;;  %v1199_v53 = vld [vmem:[#allocation7 + $0x28] sm:$0xf0]  ;;  %v1197_v54 = vld [vmem:[#allocation7 + $0x10] sm:$0xf]  ;;  %v1449_v55 = vld [vmem:[#allocation7 + $0x24] sm:$0xf0]  ;;  %657 = vmatpush.bf16.msrb.mxu1 %v1226_v50 }
  0xed   : > { %v1202_v56 = vor.u32 %v1446_v52, %v1199_v53  ;;  %v1198_v58 = vor.u32 %v1449_v55, %v1197_v54 }
  0xee   : > { %741 = vmatpush.bf16.xpose.msrb.mxu3 %v702_v59 }
  0xef   : > { %645 = vmatpush.bf16.msrb.mxu0 %v1198_v58 }
  0xf0   : > { %658 = vmatpush.bf16.msrb.mxu1 %v1202_v56 }
  0xf2   : > { %646 = vmatmul.bf16.vlgmr.msrb.gmra.mxu0 %v1977_v29 }
  0xf3   : > { %729 = vmatmul.bf16.vlgmr.msrb.gmra.mxu2 %v683_v61  ;;  %659 = vmatmul.bf16.vlgmr.msrb.gmra.mxu1 %v1977_v29 }
  0xf4   : > { %972 = vmatpush.bf16.msra.mxu0 %v1499_v22  ;;  %985 = vmatpush.bf16.msra.mxu1 %v1507_v24 }
  0xf5   : > { %742 = vmatmul.bf16.vlgmr.msrb.gmra.mxu3 %v684_v62 }
  0xf8   : > { %973 = vmatpush.bf16.msra.mxu0 %v1498_v25  ;;  %986 = vmatpush.bf16.msra.mxu1 %v1506_v26 }
  0xfc   : > { %974 = vmatpush.bf16.msra.mxu0 %v1497_v27  ;;  %987 = vmatpush.bf16.msra.mxu1 %v1505_v28 }
 0x100   : > { %975 = vmatpush.bf16.msra.mxu0 %v1496_v38  ;;  %988 = vmatpush.bf16.msra.mxu1 %v1504_v39 }
 0x104   : > { %976 = vmatpush.bf16.msra.mxu0 %v1495_v40  ;;  %989 = vmatpush.bf16.msra.mxu1 %v1503_v41 }
 0x108   : > { %977 = vmatpush.bf16.msra.mxu0 %v1494_v42 }
 0x10c   : > { %978 = vmatpush.bf16.msra.mxu0 %v1493_v45 }
 0x16f   : > { %v647_v10 = vpop.f32.mrf.mxu0 }
 0x170   : > { %v660_v8 = vpop.f32.mrf.mxu1 }
 0x171   : > { %v705_v9 = vrot.slane %v660_v8, 4 }
 0x173   : > { %v706_v29 = vsel %vm669_vm0, %v647_v10, %v705_v9  ;;  %v707_v11 = vsel %vm669_vm0, %v705_v9, %v647_v10 }
 0x174   : > { %v714_v14 = vperm.slane %v706_v29, %v1983_v43  ;;  %v708_v15 = vrot.slane %v707_v11, 4 }
 0x176   : > { %v730_v44 = vpop.f32.mrf.mxu2  ;;  %v719_v16 = vpack.c.bf16 %v714_v14, %v714_v14  ;;  %v718_v17 = vperm.slane %v708_v15, %v1983_v43 }
 0x177   : > { %v754_v47 = vsel %vm2000_vm1, 1e-10, %v730_v44  ;;  %v649_v13 = vpop.f32.mrf.mxu0  ;;  %v1502_v44 = vld [vmem:[#allocation9 + $0x50] sm:$0xff] }
 0x178   : > { %v743_v48 = vpop.f32.mrf.mxu3  ;;  %v757_v49 = vsel %vm756_vm2, %v754_v47, -inf  ;;  %v662_v12 = vpop.f32.mrf.mxu1  ;;  %v787_v18 = vsel %vm669_vm0, %v719_v16, 0  ;;  %v720_v19 = vpack.c.bf16 %v718_v17, %v718_v17  ;;  %990 = vmatpush.bf16.msra.mxu1 %v1502_v44 }
 0x179   : > { %758 = vmax.xlane.f32.xlu0 %v757_v49  ;;  %v755_v57 = vsel %vm2000_vm1, 1e-10, %v743_v48  ;;  %796 = vmatpush.bf16.msra.mxu2 %v787_v18  ;;  %v1500_v48 = vld [vmem:[#allocation9 + $0x40] sm:$0xff]  ;;  %v1815_v49 = vmov 1966171168  }
 0x17a   : > { %v760_v61 = vsel %vm756_vm2, %v755_v57, -inf  ;;  %v806_v20 = vsel %vm669_vm0, %v720_v19, 0  ;;  %v822_v50 = vunpack.c.l.s4 %v1815_v49 }
 0x17b   : > { %815 = vmatpush.bf16.msra.mxu3 %v806_v20 }
 0x17c   : > { %991 = vmatpush.bf16.msra.mxu1 %v1501_v46  ;;  %v823_v51 = vunpack.c.0.s8 %v822_v50 }
 0x17e   : > { %v732_v59 = vpop.f32.mrf.mxu2 }
 0x180   : > { %v745_v60 = vpop.f32.mrf.mxu3  ;;  %992 = vmatpush.bf16.msra.mxu1 %v1500_v48 }
 0x181   : > { %761 = vmax.xlane.f32.xlu0 %v760_v61 }
 0x1ec   : > { %v759_v62 = vpop.xlane.xlu0 %758 }
 0x1ed   : > { %v763_v63 = vsub.f32 %v754_v47, %v759_v62  ;;  %v1492_v47 = vld [vmem:[#allocation9] sm:$0xff] }
 0x1ee   : > { %979 = vmatpush.bf16.msra.mxu0 %v1492_v47 }
 0x1ef   : > { %v765_v0 = vmul.f32 1.442695, %v763_v63 }
 0x1f1   : > { %1591 = vpow2.f32 %v765_v0 }
 0x1f4   : > { %v762_v1 = vpop.xlane.xlu0 %761 }
 0x1f5   : > { %v764_v2 = vsub.f32 %v755_v57, %v762_v1 }
 0x1f7   : > { %v1592_v3 = vpop.eup %1591  ;;  %v767_v4 = vmul.f32 1.442695, %v764_v2 }
 0x1f8   : > { %v769_v5 = vsel %vm756_vm2, %v1592_v3, 0.0 }
 0x1f9   : > { %1593 = vpow2.f32 %v767_v4  ;;  %770 = vadd.xlane.f32.xlu1 %v769_v5 }
 0x1ff   : > { %v1594_v6 = vpop.eup %1593 }
 0x200   : > { %v772_v7 = vsel %vm756_vm2, %v1594_v6, 0.0 }
 0x201   : > { %773 = vadd.xlane.f32.xlu1 %v772_v7 }
 0x26c   : > { %v771_v43 = vpop.xlane.xlu1 %770 }
 0x26d   : > { %1595 = vrcp.f32 %v771_v43 }
 0x273   : > { %v1596_v30 = vpop.eup %1595 }
 0x274   : > { %v777_v31 = vmul.f32 %v1596_v30, %v1592_v3  ;;  %v774_v33 = vpop.xlane.xlu1 %773 }
 0x275   : > { %1597 = vrcp.f32 %v774_v33 }
 0x276   : > { %v781_v34 = vpack.c.bf16 %v777_v31, %v777_v31  ;;  %779 = vst.msk [vmem:[%s2021_s17] sm:$0xff] %vm756_vm2, %v777_v31 }
 0x278   : > { %1371 = vmatmul.msk.bf16.vlgmr.msra.gmra.mxu2 %vm756_vm2, %v781_v34 }
 0x27b   : > { %v1598_v35 = vpop.eup %1597 }
 0x27c   : > { %v778_v36 = vmul.f32 %v1598_v35, %v1594_v6 }
 0x27e   : > { %780 = vst.msk [vmem:[%s2021_s17 + $0x8] sm:$0xff] %vm756_vm2, %v778_v36  ;;  %v782_v37 = vpack.c.bf16 %v778_v36, %v778_v36 }
 0x280   : > { %1372 = vmatmul.msk.bf16.vlgmr.msra.gmra.mxu3 %vm756_vm2, %v782_v37 }
 0x2fb   : > { %v798_v52 = vpop.f32.mrf.mxu2 }
 0x2fc   : > { %v824_v53 = vperm.slane %v798_v52, %v823_v51 }
 0x2fe   : > { %831 = vst [vmem:[#allocation1] ss:$2 sm:$0xff] %v824_v53 }
 0x303   : > { %v800_v54 = vpop.f32.mrf.mxu2  ;;  %v817_v55 = vpop.f32.mrf.mxu3 }
 0x304   : > { %v828_v56 = vperm.slane %v817_v55, %v823_v51 }
 0x306   : > { %833 = vst [vmem:[#allocation1 + $0x1] ss:$2 sm:$0xff] %v828_v56 }
 0x30b   : > { %v819_v57 = vpop.f32.mrf.mxu3 }
 0x30d   : > { %v834_v58 = vld.sshfl [vmem:[#allocation1] sm:$0xff pattern:$0x75316420]  ;;  %v835_v59 = vld.sshfl [vmem:[#allocation1 + $0x8] sm:$0xff pattern:$0x75316420] }
 0x30e   : > { %v838_v60 = vpack.c.bf16 %v834_v58, %v834_v58  ;;  %v839_v61 = vpack.c.bf16 %v835_v59, %v835_v59 }
 0x310   : > { %980 = vmatmul.bf16.vlgmr.msra.gmra.mxu0 %v838_v60  ;;  %993 = vmatmul.bf16.vlgmr.msra.gmra.mxu1 %v839_v61 }
 0x311   : > { %1728 = shalt.err (!%p1725_p9)
}
 0x312   : > { %s1816_s17 = smov 128   ;;  %s1817_s18 = smov 8   ;;  %v1590_v62 = vld [vmem:[%s2091_s4] ss:$0 sm:$0xff]  ;;  %v999_v63 = vshrl.u32 %v748_v21, 7 }
 0x313   : > { %1520 = dma.vmem_to_hbm [thread:$0]  (%p1925_p4), %s1039_s11, 256, %s1041_s12, %s1012_s13, %s1816_s17, %s1816_s17, %s1817_s18  }
 0x314   : > { %s1439_s23 = sshll.u32 %s1880_s7, 3  ;;  %vm1000_vm3 = vcmp.lt.s32.totalorder %v999_v63, %v750_v32  ;;  %s2105_s28 = sshll.u32 %s1956_s30, 3 }
 0x315   : > { %s1022_s14 = scalar_lea.hbm %s2092_s5, %s1439_s23  ;;  %s287_s11 = scalar_lea.vmem [#allocation10], %s2105_s28 }
 0x316   : > { %s1024_s12 = sshll.u32 %s287_s11, 4  ;;  %s1026_s13 = sshll.u32 %s1022_s14, 4  ;;  %s1025_s12 = int_to_ptr.vmem [resolvable:$true] %s1024_s12  ;;  %s1027_s13 = int_to_ptr.hbm [resolvable:$true] %s1026_s13 }
 0x317   : > { %s1007_s7 = scalar_lea.sflag [#allocation6], %s1956_s30  ;;  %s1743_s16 = sshra.s32 %s1027_s13, 4  ;;  %s1744_s16 = int_to_ptr.hbm [resolvable:$true] %s1743_s16 }
 0x318   : > { %s1745_s22 = scalar_lea.hbm %s1744_s16, 8  ;;  %s1749_s17 = scalar_lea.hbm %s2092_s5, 16 }
 0x319   : > { %p1746_p10 = scmp.ne.s32.totalorder %s1744_s16, %s1745_s22  ;;  %p1750_p0 = scmp.lt.s32.totalorder %s1744_s16, %s2092_s5 }
 0x31a   : > { %p1751_p2 = scmp.lt.s32.totalorder %s1749_s17, %s1745_s22 }
 0x31b   : > { %p1747_p13 = pnand %p1746_p10, %p1925_p4 }
 0x31c   : > { %p1752_p1 = por %p1751_p2, %p1750_p0 }
 0x31d   : > { %p1748_p11 = pneg %p1747_p13 }
 0x31f   : > { %p1753_p3 = pnand %p1752_p1, %p1748_p11 }
 0x38d   : > { %v981_v0 = vpop.f32.mrf.mxu0  ;;  %v994_v1 = vpop.f32.mrf.mxu1 }
 0x38e   : > { %v982_v2 = vadd.f32 %v1590_v62, %v981_v0 }
 0x390   : > { %v995_v3 = vadd.f32 %v994_v1, %v982_v2 }
 0x392   : > { %v1003_v4 = vsel %vm1000_vm3, %v995_v3, 0.0 }
 0x393   : > { %v1004_v5 = vadd.f32 %v1003_v4, %v1973_v23 }
 0x395   : > { %v983_v21 = vpop.f32.mrf.mxu0  ;;  %v996_v6 = vpop.f32.mrf.mxu1  ;;  %1005 = vst [vmem:[%s287_s11] sm:$0xff] %v1004_v5 }
 0x396   : > { %1756 = shalt.err (!%p1753_p3)
}
 0x397   : > { %1519 = dma.vmem_to_hbm [thread:$0]  (%p1925_p4), %s1025_s12, 128, %s1027_s13, %s1007_s7  }
 0x398 PF: > { %s1055_s30 = sand.u32 1, %s1793_s25   ;;  %p2106_p5 = scmp.ge.s32.totalorder %s1805_s0, 2 }
 0x399   : > { %s1056_s20 = scalar_lea.sflag [#allocation6], %s1055_s30 }
 0x39a   : > { %p1535_p12 = pnand %p2106_p5, %p1929_p6 }
 0x39c   : > { %p1536_p7 = pneg %p1535_p12 }
 0x39e   : > { %1784 = dma.done.wait (%p1536_p7), %s1056_s20, 128  }
 0x39f   : > { %1786 = vsyncadd (%p1536_p7), %s1056_s20, 4294967168  ;;  %s1066_s23 = scalar_lea.sflag [#allocation12], %s1055_s30 }
 0x3a0   : > { %1788 = dma.done.wait (%p1536_p7), %s1066_s23, 256  }
 0x3a1   : > { %1790 = vsyncadd (%p1536_p7), %s1066_s23, 4294967040  ;;  %p32_p4 = scmp.ge.s32.totalorder %s1899_s21, 4   ;;  %s2107_s25 = smov %s1797_s26 }
 0x3a2   : > { %s2108_s26 = smov %s1801_s27  ;;  %s2109_s27 = smov %s1910_s24 }
 0x3a3   : > { %s2110_s0 = smov %s1899_s21  ;;  %34 = sbr.rel (!%p32_p4) target bundleno = 14 (0xe), region = 107 }
 0x3a8   :  { %1072 = vsyncpa [#allocation5], 1 }
 0x3a9   :  { %1074 = vsyncpa [#allocation5 + $0x1], 1 }
 0x3aa   :  { %1075 = vsyncpa [#allocation8], 1 }
 0x3ab   :  { %1076 = vsyncpa [#allocation6], 1 }
 0x3ac   :  { %1078 = vsyncpa [#allocation6 + $0x1], 1 }
 0x3ad   :  { %1079 = vsyncpa [#allocation12], 1 }
 0x3ae   :  { %1081 = vsyncpa [#allocation12 + $0x1], 1 }

</bundles_post_ra>
